<compile_context>
chip_gen: v7x
topology: tpu7x:2x2x1
jax: 0.10.0
libtpu: 0.0.40
codegen_flags: <defaults>
</compile_context>

<pallas_src>
import functools

import numpy as np
import jax
import jax.numpy as jnp
from jax.experimental import pallas as pl
from jax.experimental.pallas import tpu as pltpu


def _round_up(n, m):
    return ((n + m - 1) // m) * m


# ----------------------------- Pallas kernel ------------------------------- #
def cnn_xs_kernel(x_ref, w1_ref, b1_ref, w2_ref, b2_ref, out_ref):
    # x_ref  : (bt, L)    raw input rows (lookback lanes only)
    # w1_ref : (L, Hp)    Toeplitz-expanded conv1 weights
    # b1_ref : (1, Hp)    conv bias, expanded per (filter, time) column
    # w2_ref : (Hp, O)    fc.weight^T (zero rows beyond F*T)
    # b2_ref : (1, O)     fc bias
    # Layer 1: conv-as-matmul on the MXU, bias broadcast-add on the VPU, ReLU.
    h = jnp.dot(x_ref[...], w1_ref[...], preferred_element_type=jnp.float32)
    h = jnp.maximum(h + b1_ref[...], 0.0)
    # Layer 2: fully connected.
    y = jnp.dot(h, w2_ref[...], preferred_element_type=jnp.float32) + b2_ref[...]
    out_ref[...] = y.astype(out_ref.dtype)


def cnn_xs_pallas(x, w1, b1, w2, b2, block_b):
    pB, L = x.shape
    Hp, O = w2.shape
    grid = (pB // block_b,)
    return pl.pallas_call(
        cnn_xs_kernel,
        out_shape=jax.ShapeDtypeStruct((pB, O), jnp.float32),
        grid_spec=pltpu.PrefetchScalarGridSpec(
            num_scalar_prefetch=0,
            grid=grid,
            in_specs=[
                # Batch tile; last dim equals the full array dim (L), which
                # satisfies the (8,128)/full-extent BlockSpec rule.
                pl.BlockSpec((block_b, L), lambda i: (i, 0)),
                # Weight/bias block indices are constant across the grid, so
                # the pipeline keeps them resident (no per-step re-DMA).
                pl.BlockSpec((L, Hp), lambda i: (0, 0)),
                pl.BlockSpec((1, Hp), lambda i: (0, 0)),
                pl.BlockSpec((Hp, O), lambda i: (0, 0)),
                pl.BlockSpec((1, O), lambda i: (0, 0)),
            ],
            # Natural 8-lane output block: masked stores, but 16x fewer
            # writeback bytes than padding to 128 lanes (HBM-bound regime).
            out_specs=pl.BlockSpec((block_b, O), lambda i: (i, 0)),
        ),
        compiler_params=pltpu.CompilerParams(
            dimension_semantics=("parallel",),
        ),
    )(x, w1, b1, w2, b2)


# ------------------------- parameter packing (glue) ------------------------- #
def build_packed_params(w_conv, b_conv, w_fc, b_fc, lookback, lane=128):
    """Pack PyTorch-shaped params into lane-dense matmul operands.

    w_conv: (F, 1, K)  conv1.weight
    b_conv: (F,)       conv1.bias
    w_fc  : (O, F*T)   fc.weight   (T = lookback - K + 1)
    b_fc  : (O,)       fc.bias
    Returns W1 (L, Hp), b1 (1, Hp), W2 (Hp, O), b2 (1, O) with
      Hp = round_up(F*T, 128).
    """
    F, c_in, K = w_conv.shape
    assert c_in == 1, "CNN_XS forward views the input as (B, 1, L)"
    L = lookback
    T = L - K + 1
    FT = F * T
    O = w_fc.shape[0]
    Hp = _round_up(FT, lane)

    w_conv_np = np.asarray(w_conv, dtype=np.float32)
    W1 = np.zeros((L, Hp), dtype=np.float32)
    # Toeplitz expansion: h[:, f*T + t] = sum_k x[:, t+k] * w_conv[f, 0, k]
    for f in range(F):
        for k in range(K):
            rows = np.arange(T) + k
            cols = f * T + np.arange(T)
            W1[rows, cols] = w_conv_np[f, 0, k]

    b1 = np.zeros((1, Hp), dtype=np.float32)
    b1[0, :FT] = np.repeat(np.asarray(b_conv, dtype=np.float32), T)

    W2 = np.zeros((Hp, O), dtype=np.float32)
    W2[:FT, :] = np.asarray(w_fc, dtype=np.float32).T
    b2 = np.asarray(b_fc, dtype=np.float32).reshape(1, O)

    return jnp.asarray(W1), jnp.asarray(b1), jnp.asarray(W2), jnp.asarray(b2)


@functools.partial(jax.jit, static_argnames=("max_block_b",))
def cnn_xs_forward(x, w1, b1, w2, b2, max_block_b=1024):
    """x: (B, lookback) — the (B, 1, L) conv input with the channel dim squeezed."""
    B, L = x.shape
    # Pad the batch to a sublane multiple (8); tile large batches into
    # <= max_block_b-row blocks.  All of this fuses under jit with the kernel.
    bt = min(max_block_b, _round_up(B, 8))
    pB = _round_up(B, bt)
    xp = jnp.pad(x.astype(jnp.float32), ((0, pB - B), (0, 0))) if pB != B else x.astype(jnp.float32)
    out = cnn_xs_pallas(xp, w1, b1, w2, b2, bt)
    return out[:B]


# ------------------------- pure-JAX reference ------------------------------- #
def reference_forward(x, w_conv, b_conv, w_fc, b_fc):
    B, L = x.shape
    F, _, K = w_conv.shape
    T = L - K + 1
    conv = jnp.stack(
        [jnp.sum(x[:, None, t:t + K] * w_conv[None, :, 0, :], axis=-1) for t in range(T)],
        axis=-1,
    )                                             # (B, F, T)
    conv = conv + b_conv[None, :, None]
    h = jnp.maximum(conv, 0.0).reshape(B, F * T)  # torch Flatten: channel-major
    return h @ w_fc.T + b_fc[None, :]


# ---------------------------------- main ------------------------------------ #
if __name__ == "__main__":
    input_dim = 1          # forward() views input to (B, 1, L), so in_channels = 1
    lookback = 16
    output_dim = 8
    num_filters = 16
    kernel_size = 3
    batch = 2

    T = lookback - kernel_size + 1

    key = jax.random.PRNGKey(0)
    kx, kwc, kbc, kwf, kbf = jax.random.split(key, 5)

    # Deterministic synthetic parameters with the same shapes as the nn.Module.
    w_conv = (jax.random.normal(kwc, (num_filters, input_dim, kernel_size), jnp.float32)
              * (1.0 / np.sqrt(input_dim * kernel_size)))
    b_conv = jax.random.normal(kbc, (num_filters,), jnp.float32) * 0.1
    w_fc = (jax.random.normal(kwf, (output_dim, num_filters * T), jnp.float32)
            * (1.0 / np.sqrt(num_filters * T)))
    b_fc = jax.random.normal(kbf, (output_dim,), jnp.float32) * 0.1

    # Input: PyTorch forward does x.view(B, 1, -1); we feed (B, lookback) directly.
    x = jax.random.normal(kx, (batch, lookback), jnp.float32)

    W1, B1, W2, B2 = build_packed_params(w_conv, b_conv, w_fc, b_fc, lookback)

    out = cnn_xs_forward(x, W1, B1, W2, B2)
    out = jax.block_until_ready(out)

    ref = reference_forward(x, w_conv, b_conv, w_fc, b_fc)
    assert out.shape == (batch, output_dim)
    np.testing.assert_allclose(np.asarray(out), np.asarray(ref), rtol=1e-4, atol=1e-4)

    print("KERNEL_OK")
</pallas_src>

<mosaic_0001>
module attributes {stable_mosaic.version = 11 : i64} {
  func.func @cnn_xs_kernel(%arg0: i32, %arg1: memref<8x16xf32, #tpu.memory_space<vmem>>, %arg2: memref<16x256xf32, #tpu.memory_space<vmem>>, %arg3: memref<1x256xf32, #tpu.memory_space<vmem>>, %arg4: memref<256x8xf32, #tpu.memory_space<vmem>>, %arg5: memref<1x8xf32, #tpu.memory_space<vmem>>, %arg6: memref<8x8xf32, #tpu.memory_space<vmem>>) attributes {dimension_semantics = [#tpu.dimension_semantics<parallel>], iteration_bounds = array<i64: 1>, scalar_prefetch = 0 : i64, scratch_operands = 0 : i64, tpu.core_type = #tpu.core_type<tc>, window_params = [{transform_indices = @transform_0, window_bounds = array<i64: 8, 16>}, {pipeline_mode = #tpu.pipeline_mode<synchronous>, transform_indices = @transform_1, window_bounds = array<i64: 16, 256>}, {pipeline_mode = #tpu.pipeline_mode<synchronous>, transform_indices = @transform_2, window_bounds = array<i64: 1, 256>}, {pipeline_mode = #tpu.pipeline_mode<synchronous>, transform_indices = @transform_3, window_bounds = array<i64: 256, 8>}, {pipeline_mode = #tpu.pipeline_mode<synchronous>, transform_indices = @transform_4, window_bounds = array<i64: 1, 8>}, {transform_indices = @transform_5, window_bounds = array<i64: 8, 8>}]} {
    %c0 = arith.constant 0 : index
    %c0_0 = arith.constant 0 : index
    %0 = vector.load %arg1[%c0, %c0_0] : memref<8x16xf32, #tpu.memory_space<vmem>>, vector<8x16xf32>
    %c0_1 = arith.constant 0 : index
    %c0_2 = arith.constant 0 : index
    %1 = vector.load %arg2[%c0_1, %c0_2] : memref<16x256xf32, #tpu.memory_space<vmem>>, vector<16x256xf32>
    %cst = arith.constant dense<0.000000e+00> : vector<8x256xf32>
    %2 = tpu.matmul %0, %1, %cst {dimension_numbers = #tpu.dot_dimension_numbers<[1], [0], [0], [1], [0, 0, 1, 1], [], []>} : vector<8x16xf32>, vector<16x256xf32>, vector<8x256xf32> -> vector<8x256xf32>
    %c0_3 = arith.constant 0 : index
    %c0_4 = arith.constant 0 : index
    %3 = vector.load %arg3[%c0_3, %c0_4] : memref<1x256xf32, #tpu.memory_space<vmem>>, vector<1x256xf32>
    %4 = vector.broadcast %3 : vector<1x256xf32> to vector<8x256xf32>
    %5 = arith.addf %2, %4 : vector<8x256xf32>
    %cst_5 = arith.constant 0.000000e+00 : f32
    %6 = vector.broadcast %cst_5 : f32 to vector<8x256xf32>
    %7 = arith.maximumf %5, %6 : vector<8x256xf32>
    %c0_6 = arith.constant 0 : index
    %c0_7 = arith.constant 0 : index
    %8 = vector.load %arg4[%c0_6, %c0_7] : memref<256x8xf32, #tpu.memory_space<vmem>>, vector<256x8xf32>
    %cst_8 = arith.constant dense<0.000000e+00> : vector<8x8xf32>
    %9 = tpu.matmul %7, %8, %cst_8 {dimension_numbers = #tpu.dot_dimension_numbers<[1], [0], [0], [1], [0, 0, 1, 1], [], []>} : vector<8x256xf32>, vector<256x8xf32>, vector<8x8xf32> -> vector<8x8xf32>
    %c0_9 = arith.constant 0 : index
    %c0_10 = arith.constant 0 : index
    %10 = vector.load %arg5[%c0_9, %c0_10] : memref<1x8xf32, #tpu.memory_space<vmem>>, vector<1x8xf32>
    %11 = vector.broadcast %10 : vector<1x8xf32> to vector<8x8xf32>
    %12 = arith.addf %9, %11 : vector<8x8xf32>
    %c0_11 = arith.constant 0 : index
    %c0_12 = arith.constant 0 : index
    %13 = vector.load %arg6[%c0_11, %c0_12] : memref<8x8xf32, #tpu.memory_space<vmem>>, vector<8x8xf32>
    tpu.vector_store %arg6[%c0_11, %c0_12], %12 {strides = array<i32>} : memref<8x8xf32, #tpu.memory_space<vmem>>, vector<8x8xf32>,
    return
  }
  func.func @transform_0(%arg0: i32) -> (i32, i32) {
    %c0_i32 = arith.constant 0 : i32
    %c0_i32_0 = arith.constant 0 : i32
    return %arg0, %c0_i32 : i32, i32
  }
  func.func @transform_1(%arg0: i32) -> (i32, i32) {
    %c0_i32 = arith.constant 0 : i32
    %c0_i32_0 = arith.constant 0 : i32
    %c0_i32_1 = arith.constant 0 : i32
    return %c0_i32, %c0_i32_0 : i32, i32
  }
  func.func @transform_2(%arg0: i32) -> (i32, i32) {
    %c0_i32 = arith.constant 0 : i32
    %c0_i32_0 = arith.constant 0 : i32
    %c0_i32_1 = arith.constant 0 : i32
    return %c0_i32, %c0_i32_0 : i32, i32
  }
  func.func @transform_3(%arg0: i32) -> (i32, i32) {
    %c0_i32 = arith.constant 0 : i32
    %c0_i32_0 = arith.constant 0 : i32
    %c0_i32_1 = arith.constant 0 : i32
    return %c0_i32, %c0_i32_0 : i32, i32
  }
  func.func @transform_4(%arg0: i32) -> (i32, i32) {
    %c0_i32 = arith.constant 0 : i32
    %c0_i32_0 = arith.constant 0 : i32
    %c0_i32_1 = arith.constant 0 : i32
    return %c0_i32, %c0_i32_0 : i32, i32
  }
  func.func @transform_5(%arg0: i32) -> (i32, i32) {
    %c0_i32 = arith.constant 0 : i32
    %c0_i32_0 = arith.constant 0 : i32
    return %arg0, %c0_i32 : i32, i32
  }
}

</mosaic_0001>

<bundles_post_ra>
// kernel: cnn_xs_forward.1
= control target key start
LH: loop header
LB: loop body
LE: loop exit
PB: predicated region body
PF: predicated region fallthrough
CT: control target
= control target key end

     0   :  { %v303_v3 = vmov 0.0   ;;  %vm37_vm0 = vcmask 130048   ;;  %v27_v56 = vlaneseq  ;;  %vm223_vm1 = vcmask 64512   ;;  %s454_s1 = inlined_call_operand.vmem [shape: f32[16,256], index: 1, kind: input, shape index: {}]   ;;  %s455_s0 = inlined_call_operand.vmem [shape: f32[8,16], index: 0, kind: input, shape index: {}]   ;;  %s456_s3 = inlined_call_operand.vmem [shape: f32[256,8], index: 3, kind: input, shape index: {}]   ;;  %s457_s2 = inlined_call_operand.vmem [shape: f32[1,256], index: 2, kind: input, shape index: {}]   ;;  %s458_s4 = inlined_call_operand.vmem [shape: f32[1,8], index: 4, kind: input, shape index: {}]   ;;  %s459_s5 = inlined_call_operand.vmem [shape: f32[8,8], index: 5, kind: output, shape index: {}]  }
   0x1   :  { %v22_v0 = vld [vmem:[%s454_s1 + $0x8] sm:$0xff]  ;;  %v24_v1 = vld [vmem:[%s454_s1 + $0x18] sm:$0xff]  ;;  %v21_v2 = vld [vmem:[%s454_s1] sm:$0xff]  ;;  %105 = vmatprep.mubr.f32.mxu0 %v303_v3 }
   0x2   :  { %v266_v4 = vpack.c.bf16 %v24_v1, %v22_v0  ;;  %v23_v5 = vld [vmem:[%s454_s1 + $0x10] sm:$0xff]  ;;  %v130_v6 = vld [vmem:[%s456_s3 + $0x80] sm:$0xff]  ;;  %v131_v9 = vld [vmem:[%s456_s3 + $0x88] sm:$0xff]  ;;  %v28_v57 = vshrl.u32 %v27_v56, 7 }
   0x3   :  { %v268_v7 = vpack.c.bf16 %v23_v5, %v21_v2  ;;  %v20_v8 = vld [vmem:[%s455_s0] sm:$0xff]  ;;  %v115_v11 = vld [vmem:[%s456_s3 + $0x8] sm:$0xff]  ;;  %v270_v12 = vpack.c.bf16 %v131_v9, %v130_v6  ;;  %v132_v14 = vld [vmem:[%s456_s3 + $0x90] sm:$0xff] }
   0x4   :  { %v114_v10 = vld [vmem:[%s456_s3] sm:$0xff]  ;;  %267 = vmatprep.subr.bf16.mxu0 %v266_v4  ;;  %v133_v15 = vld [vmem:[%s456_s3 + $0x98] sm:$0xff]  ;;  %v116_v16 = vld [vmem:[%s456_s3 + $0x10] sm:$0xff]  ;;  %v29_v58 = vsub.s32 0, %v28_v57  ;;  %v33_v60 = vsub.s32 1, %v28_v57 }
   0x5   :  { %v272_v13 = vpack.c.bf16 %v115_v11, %v114_v10  ;;  %269 = vmatpush1.bf16.msra.mxu0 %v268_v7  ;;  %v274_v17 = vpack.c.bf16 %v133_v15, %v132_v14  ;;  %v117_v18 = vld [vmem:[%s456_s3 + $0x18] sm:$0xff]  ;;  %v134_v19 = vld [vmem:[%s456_s3 + $0xa0] sm:$0xff]  ;;  %v135_v20 = vld [vmem:[%s456_s3 + $0xa8] sm:$0xff]  ;;  %271 = vmatprep.subr.bf16.mxu1 %v270_v12 }
   0x6   :  { %v276_v21 = vpack.c.bf16 %v117_v18, %v116_v16  ;;  %v278_v22 = vpack.c.bf16 %v135_v20, %v134_v19  ;;  %v118_v23 = vld [vmem:[%s456_s3 + $0x20] sm:$0xff]  ;;  %v119_v24 = vld [vmem:[%s456_s3 + $0x28] sm:$0xff]  ;;  %v136_v25 = vld [vmem:[%s456_s3 + $0xb0] sm:$0xff] }
   0x7   :  { %273 = vmatpush3.bf16.msra.mxu1 %v272_v13  ;;  %v137_v26 = vld [vmem:[%s456_s3 + $0xb8] sm:$0xff]  ;;  %v280_v27 = vpack.c.bf16 %v119_v24, %v118_v23  ;;  %v120_v29 = vld [vmem:[%s456_s3 + $0x30] sm:$0xff]  ;;  %v138_v31 = vld [vmem:[%s456_s3 + $0xc0] sm:$0xff] }
   0x8   :  { %229 = vmatmul.mubr.msk.f32.vlgmr.msra.gmra.mrb[0].mxu0 %vm37_vm0, %v20_v8  ;;  %275 = vmatprep.subr.bf16.mxu1 %v274_v17  ;;  %v282_v28 = vpack.c.bf16 %v137_v26, %v136_v25  ;;  %v121_v30 = vld [vmem:[%s456_s3 + $0x38] sm:$0xff]  ;;  %v139_v32 = vld [vmem:[%s456_s3 + $0xc8] sm:$0xff]  ;;  %v122_v35 = vld [vmem:[%s456_s3 + $0x40] sm:$0xff] }
   0x9   :  { %v284_v33 = vpack.c.bf16 %v121_v30, %v120_v29  ;;  %v286_v34 = vpack.c.bf16 %v139_v32, %v138_v31  ;;  %v123_v36 = vld [vmem:[%s456_s3 + $0x48] sm:$0xff]  ;;  %v140_v37 = vld [vmem:[%s456_s3 + $0xd0] sm:$0xff]  ;;  %v141_v38 = vld [vmem:[%s456_s3 + $0xd8] sm:$0xff] }
   0xa   :  { %v288_v39 = vpack.c.bf16 %v123_v36, %v122_v35  ;;  %v290_v40 = vpack.c.bf16 %v141_v38, %v140_v37  ;;  %v124_v41 = vld [vmem:[%s456_s3 + $0x50] sm:$0xff]  ;;  %v125_v42 = vld [vmem:[%s456_s3 + $0x58] sm:$0xff]  ;;  %v142_v43 = vld [vmem:[%s456_s3 + $0xe0] sm:$0xff] }
   0xb   :  { %277 = vmatpush3.bf16.msra.mxu1 %v276_v21  ;;  %v143_v44 = vld [vmem:[%s456_s3 + $0xe8] sm:$0xff]  ;;  %v292_v45 = vpack.c.bf16 %v125_v42, %v124_v41  ;;  %v126_v47 = vld [vmem:[%s456_s3 + $0x60] sm:$0xff]  ;;  %v144_v50 = vld [vmem:[%s456_s3 + $0xf0] sm:$0xff] }
   0xc   :  { %279 = vmatprep.subr.bf16.mxu1 %v278_v22  ;;  %v294_v46 = vpack.c.bf16 %v143_v44, %v142_v43  ;;  %v127_v48 = vld [vmem:[%s456_s3 + $0x68] sm:$0xff]  ;;  %v145_v51 = vld [vmem:[%s456_s3 + $0xf8] sm:$0xff]  ;;  %v128_v53 = vld [vmem:[%s456_s3 + $0x70] sm:$0xff] }
   0xd   :  { %v296_v49 = vpack.c.bf16 %v127_v48, %v126_v47  ;;  %v298_v52 = vpack.c.bf16 %v145_v51, %v144_v50  ;;  %v129_v54 = vld [vmem:[%s456_s3 + $0x78] sm:$0xff]  ;;  %v25_v59 = vld [vmem:[%s457_s2] sm:$0x3] }
   0xe   :  { %v300_v55 = vpack.c.bf16 %v129_v54, %v128_v53  ;;  %v30_v61 = vrot.slane %v25_v59, %v29_v58  ;;  %v34_v62 = vrot.slane %v25_v59, %v33_v60  ;;  %v230_v6 = vld [vmem:[%s458_s4] ss:$0 sm:$0xff] }
   0xf   :  { %281 = vmatpush3.bf16.msra.mxu1 %v280_v27 }
  0x10   :  { %283 = vmatprep.subr.bf16.mxu1 %v282_v28 }
  0x13   :  { %285 = vmatpush3.bf16.msra.mxu1 %v284_v33 }
  0x14   :  { %287 = vmatprep.subr.bf16.mxu1 %v286_v34 }
  0x17   :  { %289 = vmatpush3.bf16.msra.mxu1 %v288_v39 }
  0x18   :  { %291 = vmatprep.subr.bf16.mxu1 %v290_v40 }
  0x1b   :  { %293 = vmatpush3.bf16.msra.mxu1 %v292_v45 }
  0x1c   :  { %295 = vmatprep.subr.bf16.mxu1 %v294_v46 }
  0x1f   :  { %297 = vmatpush3.bf16.msra.mxu1 %v296_v49 }
  0x20   :  { %299 = vmatprep.subr.bf16.mxu1 %v298_v52 }
  0x23   :  { %301 = vmatpush3.bf16.msra.mxu1 %v300_v55 }
  0xdb   :  { %v107_v63 = vpop.f32.mrb[0].mxu0 }
  0xdc   :  { %v108_v0 = vadd.f32 %v107_v63, %v30_v61  ;;  %v109_v1 = vpop.f32.mrb[1].mxu0 }
  0xdd   :  { %v110_v2 = vadd.f32 %v109_v1, %v34_v62 }
  0xde   :  { %v112_v4 = vmax.f32 %v108_v0, 0.0 }
  0xdf   :  { %v113_v3 = vmax.f32 %v110_v2, 0.0 }
  0xe1   :  { %217 = vmatprep.mubr.f32.mxu1 %v113_v3 }
  0xe2   :  { %218 = vmatmul.mubr.f32.vlgmr.msra.gmra.mrb[0].mxu1 %v112_v4 }
 0x1b5   :  { %v263_v5 = vpop.f32.mrb[0].mxu1 }
 0x1b6   :  { %v264_v7 = vpop.f32.mrb[1].mxu1 }
 0x1b7   :  { %v265_v8 = vadd.f32 %v264_v7, %v263_v5 }
 0x1b9   :  { %v220_v9 = vadd.f32 %v265_v8, %v230_v6 }
 0x1bb   :  { %224 = vst.msk [vmem:[%s459_s5] sm:$0xff] %vm223_vm1, %v220_v9 }

</bundles_post_ra>
